<compile_context>
chip_gen: v7x
topology: tpu7x:2x2x1
jax: 0.10.0
libtpu: 0.0.40
codegen_flags: <defaults>
</compile_context>

<pallas_src>
from functools import partial

import jax
import jax.numpy as jnp
import numpy as np
from jax.experimental import pallas as pl
from jax.experimental.pallas import tpu as pltpu

LANE = 128  # pad feature dim to a full vreg lane width


# ----------------------------- Pallas kernel ------------------------------ #

def _gnn_fused_kernel(a_ref, x_ref, w1_ref, b1_ref, w2_ref, b2_ref,
                      o_ref, z_ref):
    # a_ref : (N, N)     bf16  row-normalized adjacency (mean aggregation)
    # x_ref : (N, Hp)    bf16  lane-padded node features
    # w1_ref: (2*Hp, Hp) bf16  stacked, pre-transposed [W1_l^T ; W1_r^T]
    # b1_ref: (1, Hp)    f32   lane-padded bias of lin_l (lin_r has no bias)
    # w2_ref: (2*Hp, Hp) bf16  stacked, pre-transposed [W2_l^T ; W2_r^T]
    # b2_ref: (1, Hp)    f32
    # o_ref : (N, Hp)    f32   lane-dense output
    # z_ref : (N, 2*Hp)  bf16  VMEM scratch holding [agg | x] per layer
    hp = x_ref.shape[1]
    a = a_ref[...]
    x = x_ref[...]

    # ---- layer 1: relu(SAGEConv(x)) ----
    agg = jnp.dot(a, x, preferred_element_type=jnp.float32)          # mean agg
    z_ref[:, :hp] = agg.astype(jnp.bfloat16)
    z_ref[:, hp:] = x
    h = jnp.dot(z_ref[...], w1_ref[...],
                preferred_element_type=jnp.float32) + b1_ref[...]
    h = jnp.maximum(h, 0.0)
    # TODO(synk): dropout(p=0.5) is identity in eval mode; training-mode RNG
    # dropout is not reproduced here.
    h_bf = h.astype(jnp.bfloat16)

    # ---- layer 2: SAGEConv(h) ----
    agg2 = jnp.dot(a, h_bf, preferred_element_type=jnp.float32)
    z_ref[:, :hp] = agg2.astype(jnp.bfloat16)
    z_ref[:, hp:] = h_bf
    out = jnp.dot(z_ref[...], w2_ref[...],
                  preferred_element_type=jnp.float32) + b2_ref[...]
    o_ref[...] = out.astype(o_ref.dtype)


def gnn_fused_pallas(a_norm, x_p, w1, b1, w2, b2):
    n, hp = x_p.shape
    vmem = pl.BlockSpec(memory_space=pltpu.MemorySpace.VMEM)
    return pl.pallas_call(
        _gnn_fused_kernel,
        out_shape=jax.ShapeDtypeStruct((n, hp), jnp.float32),
        in_specs=[vmem] * 6,
        out_specs=vmem,
        scratch_shapes=[pltpu.VMEM((n, 2 * hp), jnp.bfloat16)],
    )(a_norm, x_p, w1, b1, w2, b2)


# ------------------------------- glue (JAX) -------------------------------- #

def normalized_adjacency(edge_index, num_nodes):
    """A_norm[i, j] = (#edges j->i) / in_degree(i); rows with degree 0 stay 0."""
    src, dst = edge_index[0], edge_index[1]
    a = jnp.zeros((num_nodes, num_nodes), jnp.float32).at[dst, src].add(1.0)
    deg = a.sum(axis=1, keepdims=True)
    return jnp.where(deg > 0, a / jnp.maximum(deg, 1.0), 0.0)


def _pad_axis(arr, target, axis):
    pad = [(0, 0)] * arr.ndim
    pad[axis] = (0, target - arr.shape[axis])
    return jnp.pad(arr, pad)


def _pack_sage(w_l, b_l, w_r, hp):
    """torch-layout (out,in) weights -> stacked, pre-transposed, lane-padded."""
    wl_t = _pad_axis(_pad_axis(w_l.T, hp, 0), hp, 1)   # (hp, hp), (in, out)
    wr_t = _pad_axis(_pad_axis(w_r.T, hp, 0), hp, 1)
    w = jnp.concatenate([wl_t, wr_t], axis=0).astype(jnp.bfloat16)  # (2hp, hp)
    b = _pad_axis(b_l, hp, 1).astype(jnp.float32)                   # (1, hp)
    return w, b


def pack_params(params, hp=LANE):
    """One-time host-side packing (pre-transpose, stack, lane-pad, bf16)."""
    w1, b1 = _pack_sage(params["w1_l"], params["b1_l"], params["w1_r"], hp)
    w2, b2 = _pack_sage(params["w2_l"], params["b2_l"], params["w2_r"], hp)
    return {"w1": w1, "b1": b1, "w2": w2, "b2": b2}


def gnn_forward(x, edge_index, packed):
    n, h = x.shape
    hp = packed["b1"].shape[1]
    # Dense scatter runs once per forward; cache a_norm externally if the
    # graph is static.
    a_norm = normalized_adjacency(edge_index, n).astype(jnp.bfloat16)
    x_p = _pad_axis(x, hp, 1).astype(jnp.bfloat16)
    out_p = gnn_fused_pallas(a_norm, x_p,
                             packed["w1"], packed["b1"],
                             packed["w2"], packed["b2"])
    return out_p[:, :h]


def gnn_forward_ref(x, edge_index, params):
    """Pure-JAX f32 reference (same math, no Pallas)."""
    n = x.shape[0]
    a_norm = normalized_adjacency(edge_index, n)

    def conv(xx, wl, bl, wr):
        return (a_norm @ xx) @ wl.T + bl + xx @ wr.T

    h = jax.nn.relu(conv(x, params["w1_l"], params["b1_l"], params["w1_r"]))
    return conv(h, params["w2_l"], params["b2_l"], params["w2_r"])


def init_params(key, hidden):
    ks = jax.random.split(key, 6)
    scale = 1.0 / np.sqrt(hidden)
    u = lambda k, shp: jax.random.uniform(k, shp, jnp.float32, -scale, scale)
    return {
        "w1_l": u(ks[0], (hidden, hidden)),
        "b1_l": u(ks[1], (1, hidden)),
        "w1_r": u(ks[2], (hidden, hidden)),
        "w2_l": u(ks[3], (hidden, hidden)),
        "b2_l": u(ks[4], (1, hidden)),
        "w2_r": u(ks[5], (hidden, hidden)),
    }


if __name__ == "__main__":
    key = jax.random.PRNGKey(0)
    k_x, k_e, k_p = jax.random.split(key, 3)

    num_nodes = 64
    hidden_channels = 32
    num_edges = 256

    x = jax.random.normal(k_x, (num_nodes, hidden_channels), jnp.float32)
    edge_index = jax.random.randint(k_e, (2, num_edges), 0, num_nodes, jnp.int32)
    params = init_params(k_p, hidden_channels)
    packed = pack_params(params, LANE)   # one-time host-side packing

    out = jax.jit(gnn_forward)(x, edge_index, packed)
    out = jax.block_until_ready(out)

    ref = jax.block_until_ready(gnn_forward_ref(x, edge_index, params))
    # bf16 MXU inputs with f32 accumulation -> relaxed tolerance vs f32 ref.
    np.testing.assert_allclose(np.asarray(out), np.asarray(ref),
                               rtol=5e-2, atol=5e-2)

    print("KERNEL_OK")
</pallas_src>

<mosaic_0001>
module attributes {stable_mosaic.version = 11 : i64} {
  func.func private @main(%arg0: i32) attributes {dimension_semantics = [#tpu.dimension_semantics<core_parallel>], iteration_bounds = array<i64: 2>, tpu.core_type = #tpu.core_type<sc_scalar_subcore>, window_params = []} {
    return
  }
}

module attributes {stable_mosaic.version = 11 : i64} {
  func.func private @main(%arg0: i32) attributes {dimension_semantics = [#tpu.dimension_semantics<core_parallel>], iteration_bounds = array<i64: 2>, tpu.core_type = #tpu.core_type<sc_scalar_subcore>, window_params = []} {
    return
  }
}

module attributes {stable_mosaic.version = 11 : i64} {
  func.func @_gnn_fused_kernel(%arg0: memref<64x64xbf16, #tpu.memory_space<vmem>>, %arg1: memref<64x128xbf16, #tpu.memory_space<vmem>>, %arg2: memref<256x128xbf16, #tpu.memory_space<vmem>>, %arg3: memref<1x128xf32, #tpu.memory_space<vmem>>, %arg4: memref<256x128xbf16, #tpu.memory_space<vmem>>, %arg5: memref<1x128xf32, #tpu.memory_space<vmem>>, %arg6: memref<64x128xf32, #tpu.memory_space<vmem>>, %arg7: memref<64x256xbf16, #tpu.memory_space<vmem>>) attributes {dimension_semantics = [], scalar_prefetch = 0 : i64, scratch_operands = 1 : i64, tpu.core_type = #tpu.core_type<tc>} {
    %c0 = arith.constant 0 : index
    %c0_0 = arith.constant 0 : index
    %0 = vector.load %arg0[%c0, %c0_0] : memref<64x64xbf16, #tpu.memory_space<vmem>>, vector<64x64xbf16>
    %c0_1 = arith.constant 0 : index
    %c0_2 = arith.constant 0 : index
    %1 = vector.load %arg1[%c0_1, %c0_2] : memref<64x128xbf16, #tpu.memory_space<vmem>>, vector<64x128xbf16>
    %cst = arith.constant dense<0.000000e+00> : vector<64x128xf32>
    %2 = tpu.matmul %0, %1, %cst {dimension_numbers = #tpu.dot_dimension_numbers<[1], [0], [0], [1], [0, 0, 1, 1], [], []>} : vector<64x64xbf16>, vector<64x128xbf16>, vector<64x128xf32> -> vector<64x128xf32>
    %3 = arith.truncf %2 : vector<64x128xf32> to vector<64x128xbf16>
    %c0_3 = arith.constant 0 : index
    %c0_4 = arith.constant 0 : index
    %4 = vector.load %arg7[%c0_3, %c0_4] : memref<64x256xbf16, #tpu.memory_space<vmem>>, vector<64x128xbf16>
    tpu.vector_store %arg7[%c0_3, %c0_4], %3 {strides = array<i32>} : memref<64x256xbf16, #tpu.memory_space<vmem>>, vector<64x128xbf16>,
    %c0_5 = arith.constant 0 : index
    %c128 = arith.constant 128 : index
    %5 = vector.load %arg7[%c0_5, %c128] : memref<64x256xbf16, #tpu.memory_space<vmem>>, vector<64x128xbf16>
    tpu.vector_store %arg7[%c0_5, %c128], %1 {strides = array<i32>} : memref<64x256xbf16, #tpu.memory_space<vmem>>, vector<64x128xbf16>,
    %c0_6 = arith.constant 0 : index
    %c0_7 = arith.constant 0 : index
    %6 = vector.load %arg7[%c0_6, %c0_7] : memref<64x256xbf16, #tpu.memory_space<vmem>>, vector<64x256xbf16>
    %c0_8 = arith.constant 0 : index
    %c0_9 = arith.constant 0 : index
    %7 = vector.load %arg2[%c0_8, %c0_9] : memref<256x128xbf16, #tpu.memory_space<vmem>>, vector<256x128xbf16>
    %cst_10 = arith.constant dense<0.000000e+00> : vector<64x128xf32>
    %8 = tpu.matmul %6, %7, %cst_10 {dimension_numbers = #tpu.dot_dimension_numbers<[1], [0], [0], [1], [0, 0, 1, 1], [], []>} : vector<64x256xbf16>, vector<256x128xbf16>, vector<64x128xf32> -> vector<64x128xf32>
    %c0_11 = arith.constant 0 : index
    %c0_12 = arith.constant 0 : index
    %9 = vector.load %arg3[%c0_11, %c0_12] : memref<1x128xf32, #tpu.memory_space<vmem>>, vector<1x128xf32>
    %10 = vector.broadcast %9 : vector<1x128xf32> to vector<64x128xf32>
    %11 = arith.addf %8, %10 : vector<64x128xf32>
    %cst_13 = arith.constant 0.000000e+00 : f32
    %12 = vector.broadcast %cst_13 : f32 to vector<64x128xf32>
    %13 = arith.maximumf %11, %12 : vector<64x128xf32>
    %14 = arith.truncf %13 : vector<64x128xf32> to vector<64x128xbf16>
    %cst_14 = arith.constant dense<0.000000e+00> : vector<64x128xf32>
    %15 = tpu.matmul %0, %14, %cst_14 {dimension_numbers = #tpu.dot_dimension_numbers<[1], [0], [0], [1], [0, 0, 1, 1], [], []>} : vector<64x64xbf16>, vector<64x128xbf16>, vector<64x128xf32> -> vector<64x128xf32>
    %16 = arith.truncf %15 : vector<64x128xf32> to vector<64x128xbf16>
    %c0_15 = arith.constant 0 : index
    %c0_16 = arith.constant 0 : index
    %17 = vector.load %arg7[%c0_15, %c0_16] : memref<64x256xbf16, #tpu.memory_space<vmem>>, vector<64x128xbf16>
    tpu.vector_store %arg7[%c0_15, %c0_16], %16 {strides = array<i32>} : memref<64x256xbf16, #tpu.memory_space<vmem>>, vector<64x128xbf16>,
    %c0_17 = arith.constant 0 : index
    %c128_18 = arith.constant 128 : index
    %18 = vector.load %arg7[%c0_17, %c128_18] : memref<64x256xbf16, #tpu.memory_space<vmem>>, vector<64x128xbf16>
    tpu.vector_store %arg7[%c0_17, %c128_18], %14 {strides = array<i32>} : memref<64x256xbf16, #tpu.memory_space<vmem>>, vector<64x128xbf16>,
    %c0_19 = arith.constant 0 : index
    %c0_20 = arith.constant 0 : index
    %19 = vector.load %arg7[%c0_19, %c0_20] : memref<64x256xbf16, #tpu.memory_space<vmem>>, vector<64x256xbf16>
    %c0_21 = arith.constant 0 : index
    %c0_22 = arith.constant 0 : index
    %20 = vector.load %arg4[%c0_21, %c0_22] : memref<256x128xbf16, #tpu.memory_space<vmem>>, vector<256x128xbf16>
    %cst_23 = arith.constant dense<0.000000e+00> : vector<64x128xf32>
    %21 = tpu.matmul %19, %20, %cst_23 {dimension_numbers = #tpu.dot_dimension_numbers<[1], [0], [0], [1], [0, 0, 1, 1], [], []>} : vector<64x256xbf16>, vector<256x128xbf16>, vector<64x128xf32> -> vector<64x128xf32>
    %c0_24 = arith.constant 0 : index
    %c0_25 = arith.constant 0 : index
    %22 = vector.load %arg5[%c0_24, %c0_25] : memref<1x128xf32, #tpu.memory_space<vmem>>, vector<1x128xf32>
    %23 = vector.broadcast %22 : vector<1x128xf32> to vector<64x128xf32>
    %24 = arith.addf %21, %23 : vector<64x128xf32>
    %c0_26 = arith.constant 0 : index
    %c0_27 = arith.constant 0 : index
    %25 = vector.load %arg6[%c0_26, %c0_27] : memref<64x128xf32, #tpu.memory_space<vmem>>, vector<64x128xf32>
    tpu.vector_store %arg6[%c0_26, %c0_27], %24 {strides = array<i32>} : memref<64x128xf32, #tpu.memory_space<vmem>>, vector<64x128xf32>,
    return
  }
}

</mosaic_0001>

<bundles_post_ra>
// kernel: gnn_forward.1
= control target key start
LH: loop header
LB: loop body
LE: loop exit
PB: predicated region body
PF: predicated region fallthrough
CT: control target
= control target key end

     0   :  { %vm84_vm0 = vcmask 523264   ;;  %s1124_s1 = inlined_call_operand.vmem [shape: bf16[64,128], index: 1, kind: input, shape index: {}]   ;;  %s1125_s0 = inlined_call_operand.vmem [shape: bf16[64,64], index: 0, kind: input, shape index: {}]   ;;  %s1126_s2 = inlined_call_operand.vmem [shape: bf16[256,128], index: 2, kind: input, shape index: {}]   ;;  %s1127_s4 = inlined_call_operand.vmem [shape: bf16[256,128], index: 4, kind: input, shape index: {}]   ;;  %s1128_s3 = inlined_call_operand.vmem [shape: f32[1,128], index: 3, kind: input, shape index: {}]   ;;  %s1129_s5 = inlined_call_operand.vmem [shape: f32[1,128], index: 5, kind: input, shape index: {}]   ;;  %s1130_s6 = inlined_call_operand.vmem [shape: f32[64,128], index: 6, kind: output, shape index: {}]  }
   0x1   :  { %v869_v0 = vld [vmem:[%s1124_s1] sm:$0xff]   ;;  %v870_v1 = vld [vmem:[%s1124_s1 + $0x8] sm:$0xff]   ;;  %v953_v2 = vld [vmem:[%s1124_s1 + $0x10] sm:$0xff]  }
   0x2   :  { %837 = vmatprep.subr.bf16.mxu1 %v869_v0  ;;  %v873_v3 = vld [vmem:[%s1125_s0] sm:$0xff]   ;;  %v872_v4 = vld [vmem:[%s1124_s1 + $0x18] sm:$0xff]   ;;  %v971_v6 = vld [vmem:[%s1125_s0 + $0x8] sm:$0xff]  }
   0x3   :  { %838 = vmatpush3.bf16.msra.mxu1 %v869_v0  ;;  %845 = vmatprep.mubr.msk.bf16.mxu1 %vm84_vm0, %v873_v3  ;;  %v877_v5 = vld [vmem:[%s1126_s2 + $0x40] sm:$0xff]   ;;  %v976_v7 = vld [vmem:[%s1125_s0 + $0x10] sm:$0xff]   ;;  %v879_v9 = vld [vmem:[%s1126_s2 + $0x48] sm:$0xff]  }
   0x4   :  { %839 = vmatprep.subr.bf16.mxu1 %v870_v1  ;;  %861 = vmatprep.mubr.msk.bf16.mxu0 %vm84_vm0, %v873_v3  ;;  %v878_v8 = vld [vmem:[%s1126_s2] sm:$0xff]   ;;  %v880_v10 = vld [vmem:[%s1126_s2 + $0x8] sm:$0xff]   ;;  %v881_v11 = vld [vmem:[%s1126_s2 + $0x50] sm:$0xff]  }
   0x5   :  { %v997_v12 = vld [vmem:[%s1125_s0 + $0x18] sm:$0xff]   ;;  %v882_v13 = vld [vmem:[%s1126_s2 + $0x10] sm:$0xff]   ;;  %v885_v16 = vld [vmem:[%s1126_s2 + $0x60] sm:$0xff]  }
   0x6   :  { %v883_v14 = vld [vmem:[%s1126_s2 + $0x58] sm:$0xff]   ;;  %v886_v17 = vld [vmem:[%s1126_s2 + $0x20] sm:$0xff]   ;;  %v887_v18 = vld [vmem:[%s1126_s2 + $0x68] sm:$0xff]  }
   0x7   :  { %840 = vmatpush3.bf16.msra.mxu1 %v870_v1  ;;  %v884_v15 = vld [vmem:[%s1126_s2 + $0x18] sm:$0xff]   ;;  %v888_v19 = vld [vmem:[%s1126_s2 + $0x28] sm:$0xff]   ;;  %v889_v20 = vld [vmem:[%s1126_s2 + $0x70] sm:$0xff]  }
   0x8   :  { %841 = vmatprep.subr.bf16.mxu1 %v953_v2  ;;  %v890_v21 = vld [vmem:[%s1126_s2 + $0x30] sm:$0xff]   ;;  %v891_v22 = vld [vmem:[%s1126_s2 + $0x78] sm:$0xff]   ;;  %v703_v37 = vld [vmem:[%s1128_s3] ss:$0 sm:$0xff] }
   0x9   :  { %v892_v23 = vld [vmem:[%s1126_s2 + $0x38] sm:$0xff]  }
   0xb   :  { %842 = vmatpush3.bf16.msra.mxu1 %v953_v2 }
   0xc   :  { %843 = vmatprep.subr.bf16.mxu1 %v872_v4 }
   0xf   :  { %844 = vmatpush3.bf16.msra.mxu1 %v872_v4 }
  0x10   :  { %749 = vmatprep.subr.bf16.mxu1 %v877_v5 }
  0x12   :  { %846 = vmatmul.mubr.msk.bf16.vlgmr.msra.gmra.mrb[0].mxu1 %vm84_vm0, %v971_v6 }
  0x13   :  { %849 = vmatprep.mubr.msk.bf16.mxu1 %vm84_vm0, %v976_v7  ;;  %750 = vmatpush3.bf16.msra.mxu1 %v878_v8 }
  0x14   :  { %751 = vmatprep.subr.bf16.mxu1 %v879_v9 }
  0x17   :  { %752 = vmatpush3.bf16.msra.mxu1 %v880_v10 }
  0x18   :  { %753 = vmatprep.subr.bf16.mxu1 %v881_v11 }
  0x1a   :  { %850 = vmatmul.mubr.msk.bf16.gmra.mrb[4].mxu1 %vm84_vm0, %v997_v12 }
  0x1b   :  { %754 = vmatpush3.bf16.msra.mxu1 %v882_v13  ;;  %349 = vmatprep.mubr.bf16.mxu1 %v869_v0 }
  0x1c   :  { %755 = vmatprep.subr.bf16.mxu1 %v883_v14 }
  0x1f   :  { %756 = vmatpush3.bf16.msra.mxu1 %v884_v15 }
  0x20   :  { %757 = vmatprep.subr.bf16.mxu1 %v885_v16 }
  0x23   :  { %758 = vmatpush3.bf16.msra.mxu1 %v886_v17 }
  0x24   :  { %759 = vmatprep.subr.bf16.mxu1 %v887_v18 }
  0x27   :  { %760 = vmatpush3.bf16.msra.mxu1 %v888_v19 }
  0x28   :  { %761 = vmatprep.subr.bf16.mxu1 %v889_v20  ;;  %v893_v20 = vld [vmem:[%s1127_s4 + $0x40] sm:$0xff]  }
  0x2b   :  { %762 = vmatpush3.bf16.msra.mxu1 %v890_v21  ;;  %v894_v21 = vld [vmem:[%s1127_s4] sm:$0xff]  }
  0x2c   :  { %763 = vmatprep.subr.bf16.mxu1 %v891_v22  ;;  %v895_v22 = vld [vmem:[%s1127_s4 + $0x48] sm:$0xff]  }
  0x2f   :  { %764 = vmatpush3.bf16.msra.mxu1 %v892_v23  ;;  %v896_v23 = vld [vmem:[%s1127_s4 + $0x8] sm:$0xff]  }
  0xe5   :  { %v847_v24 = vpop.f32.mrb[0].mxu1 }
  0xe6   :  { %v131_v25 = vpop.f32.mrb[1].mxu1 }
  0xe7   :  { %v848_v26 = vpop.f32.mrb[2].mxu1 }
  0xe8   :  { %v163_v27 = vpack.c.bf16 %v848_v26, %v847_v24  ;;  %v134_v28 = vpop.f32.mrb[3].mxu1  ;;  %v897_v24 = vld [vmem:[%s1127_s4 + $0x50] sm:$0xff]   ;;  %v901_v26 = vld [vmem:[%s1127_s4 + $0x60] sm:$0xff]  }
  0xe9   :  { %v162_v29 = vpack.c.bf16 %v134_v28, %v131_v25  ;;  %v898_v25 = vld [vmem:[%s1127_s4 + $0x10] sm:$0xff]   ;;  %v904_v28 = vld [vmem:[%s1127_s4 + $0x28] sm:$0xff]  }
  0xeb   :  { %350 = vmatmul.mubr.bf16.vlgmr.msra.gmra.mrb[8].mxu1 %v162_v29  ;;  %v905_v29 = vld [vmem:[%s1127_s4 + $0x70] sm:$0xff]  }
  0xec   :  { %357 = vmatprep.mubr.bf16.mxu1 %v870_v1 }
  0xed   :  { %v851_v30 = vpop.f32.mrb[4].mxu1 }
  0xee   :  { %v147_v31 = vpop.f32.mrb[5].mxu1 }
  0xef   :  { %v852_v32 = vpop.f32.mrb[6].mxu1 }
  0xf0   :  { %v165_v33 = vpack.c.bf16 %v852_v32, %v851_v30  ;;  %v150_v34 = vpop.f32.mrb[7].mxu1  ;;  %v906_v30 = vld [vmem:[%s1127_s4 + $0x30] sm:$0xff]   ;;  %v908_v32 = vld [vmem:[%s1127_s4 + $0x38] sm:$0xff]  }
  0xf1   :  { %v164_v35 = vpack.c.bf16 %v150_v34, %v147_v31  ;;  %v907_v31 = vld [vmem:[%s1127_s4 + $0x78] sm:$0xff]  }
  0xf3   :  { %358 = vmatmul.mubr.bf16.gmra.mrb[12].mxu1 %v163_v27  ;;  %v902_v27 = vld [vmem:[%s1127_s4 + $0x20] sm:$0xff]  }
  0xf4   :  { %365 = vmatprep.mubr.bf16.mxu1 %v953_v2 }
  0xfb   :  { %366 = vmatmul.mubr.bf16.gmra.mrb[16].mxu1 %v164_v35 }
  0xfc   :  { %373 = vmatprep.mubr.bf16.mxu1 %v872_v4 }
 0x103   :  { %374 = vmatmul.mubr.bf16.gmra.mrb[20].mxu1 %v165_v33 }
 0x1be   :  { %v765_v36 = vpop.f32.mrb[8].mxu1 }
 0x1bf   :  { %v766_v38 = vpop.f32.mrb[9].mxu1 }
 0x1c0   :  { %v767_v39 = vadd.f32 %v766_v38, %v765_v36  ;;  %v768_v40 = vpop.f32.mrb[10].mxu1 }
 0x1c1   :  { %v769_v41 = vpop.f32.mrb[11].mxu1 }
 0x1c2   :  { %v352_v42 = vadd.f32 %v767_v39, %v703_v37  ;;  %v770_v43 = vadd.f32 %v769_v41, %v768_v40 }
 0x1c4   :  { %v355_v44 = vadd.f32 %v770_v43, %v703_v37  ;;  %v382_v45 = vmax.f32 %v352_v42, 0.0 }
 0x1c6   :  { %v383_v46 = vmax.f32 %v355_v44, 0.0  ;;  %v771_v47 = vpop.f32.mrb[12].mxu1 }
 0x1c7   :  { %v772_v48 = vpop.f32.mrb[13].mxu1 }
 0x1c8   :  { %v773_v49 = vadd.f32 %v772_v48, %v771_v47  ;;  %v774_v50 = vpop.f32.mrb[14].mxu1  ;;  %v390_v51 = vpack.c.bf16 %v383_v46, %v382_v45  ;;  %v724_v46 = vld [vmem:[%s1129_s5] ss:$0 sm:$0xff] }
 0x1c9   :  { %v775_v52 = vpop.f32.mrb[15].mxu1 }
 0x1ca   :  { %v360_v53 = vadd.f32 %v773_v49, %v703_v37  ;;  %v776_v54 = vadd.f32 %v775_v52, %v774_v50  ;;  %853 = vmatprep.subr.bf16.mxu0 %v390_v51 }
 0x1cb   :  { %854 = vmatpush3.bf16.msra.mxu0 %v390_v51 }
 0x1cc   :  { %v363_v55 = vadd.f32 %v776_v54, %v703_v37  ;;  %v384_v56 = vmax.f32 %v360_v53, 0.0 }
 0x1ce   :  { %v385_v57 = vmax.f32 %v363_v55, 0.0  ;;  %v777_v58 = vpop.f32.mrb[16].mxu1 }
 0x1cf   :  { %v778_v59 = vpop.f32.mrb[17].mxu1 }
 0x1d0   :  { %v779_v60 = vadd.f32 %v778_v59, %v777_v58  ;;  %v780_v61 = vpop.f32.mrb[18].mxu1  ;;  %v1038_v62 = vpack.c.bf16 %v385_v57, %v384_v56 }
 0x1d1   :  { %v781_v63 = vpop.f32.mrb[19].mxu1 }
 0x1d2   :  { %v368_v0 = vadd.f32 %v779_v60, %v703_v37  ;;  %v782_v1 = vadd.f32 %v781_v63, %v780_v61  ;;  %855 = vmatprep.subr.bf16.mxu0 %v1038_v62 }
 0x1d3   :  { %856 = vmatpush3.bf16.msra.mxu0 %v1038_v62 }
 0x1d4   :  { %v371_v2 = vadd.f32 %v782_v1, %v703_v37  ;;  %v386_v3 = vmax.f32 %v368_v0, 0.0 }
 0x1d6   :  { %v387_v4 = vmax.f32 %v371_v2, 0.0  ;;  %v783_v5 = vpop.f32.mrb[20].mxu1 }
 0x1d7   :  { %v784_v8 = vpop.f32.mrb[21].mxu1 }
 0x1d8   :  { %v785_v9 = vadd.f32 %v784_v8, %v783_v5  ;;  %v786_v10 = vpop.f32.mrb[22].mxu1  ;;  %v392_v11 = vpack.c.bf16 %v387_v4, %v386_v3 }
 0x1d9   :  { %v787_v13 = vpop.f32.mrb[23].mxu1 }
 0x1da   :  { %v376_v14 = vadd.f32 %v785_v9, %v703_v37  ;;  %v788_v15 = vadd.f32 %v787_v13, %v786_v10  ;;  %857 = vmatprep.subr.bf16.mxu0 %v392_v11 }
 0x1db   :  { %858 = vmatpush3.bf16.msra.mxu0 %v392_v11 }
 0x1dc   :  { %v379_v16 = vadd.f32 %v788_v15, %v703_v37  ;;  %v388_v17 = vmax.f32 %v376_v14, 0.0 }
 0x1de   :  { %v389_v18 = vmax.f32 %v379_v16, 0.0 }
 0x1e0   :  { %v393_v19 = vpack.c.bf16 %v389_v18, %v388_v17 }
 0x1e2   :  { %859 = vmatprep.subr.bf16.mxu0 %v393_v19 }
 0x1e3   :  { %860 = vmatpush3.bf16.msra.mxu0 %v393_v19 }
 0x1e4   :  { %797 = vmatprep.subr.bf16.mxu0 %v893_v20 }
 0x1e6   :  { %862 = vmatmul.mubr.msk.bf16.vlgmr.msra.gmra.mrb[0].mxu0 %vm84_vm0, %v971_v6  ;;  %v899_v6 = vld [vmem:[%s1127_s4 + $0x58] sm:$0xff]  }
 0x1e7   :  { %865 = vmatprep.mubr.msk.bf16.mxu0 %vm84_vm0, %v976_v7  ;;  %798 = vmatpush3.bf16.msra.mxu0 %v894_v21  ;;  %v900_v7 = vld [vmem:[%s1127_s4 + $0x18] sm:$0xff]  }
 0x1e8   :  { %799 = vmatprep.subr.bf16.mxu0 %v895_v22 }
 0x1eb   :  { %800 = vmatpush3.bf16.msra.mxu0 %v896_v23 }
 0x1ec   :  { %801 = vmatprep.subr.bf16.mxu0 %v897_v24 }
 0x1ee   :  { %866 = vmatmul.mubr.msk.bf16.gmra.mrb[4].mxu0 %vm84_vm0, %v997_v12  ;;  %v903_v12 = vld [vmem:[%s1127_s4 + $0x68] sm:$0xff]  }
 0x1ef   :  { %646 = vmatprep.mubr.bf16.mxu0 %v390_v51  ;;  %802 = vmatpush3.bf16.msra.mxu0 %v898_v25 }
 0x1f0   :  { %803 = vmatprep.subr.bf16.mxu0 %v899_v6 }
 0x1f3   :  { %804 = vmatpush3.bf16.msra.mxu0 %v900_v7 }
 0x1f4   :  { %805 = vmatprep.subr.bf16.mxu0 %v901_v26 }
 0x1f7   :  { %806 = vmatpush3.bf16.msra.mxu0 %v902_v27 }
 0x1f8   :  { %807 = vmatprep.subr.bf16.mxu0 %v903_v12 }
 0x1fb   :  { %808 = vmatpush3.bf16.msra.mxu0 %v904_v28 }
 0x1fc   :  { %809 = vmatprep.subr.bf16.mxu0 %v905_v29 }
 0x1ff   :  { %810 = vmatpush3.bf16.msra.mxu0 %v906_v30 }
 0x200   :  { %811 = vmatprep.subr.bf16.mxu0 %v907_v31 }
 0x203   :  { %812 = vmatpush3.bf16.msra.mxu0 %v908_v32 }
 0x2b9   :  { %v863_v33 = vpop.f32.mrb[0].mxu0 }
 0x2ba   :  { %v428_v34 = vpop.f32.mrb[1].mxu0 }
 0x2bb   :  { %v864_v35 = vpop.f32.mrb[2].mxu0 }
 0x2bc   :  { %v460_v36 = vpack.c.bf16 %v864_v35, %v863_v33  ;;  %v431_v37 = vpop.f32.mrb[3].mxu0 }
 0x2bd   :  { %v459_v38 = vpack.c.bf16 %v431_v37, %v428_v34 }
 0x2bf   :  { %647 = vmatmul.mubr.bf16.vlgmr.msra.gmra.mrb[8].mxu0 %v459_v38 }
 0x2c0   :  { %654 = vmatprep.mubr.bf16.mxu0 %v1038_v62 }
 0x2c1   :  { %v867_v39 = vpop.f32.mrb[4].mxu0 }
 0x2c2   :  { %v444_v40 = vpop.f32.mrb[5].mxu0 }
 0x2c3   :  { %v868_v41 = vpop.f32.mrb[6].mxu0 }
 0x2c4   :  { %v462_v42 = vpack.c.bf16 %v868_v41, %v867_v39  ;;  %v447_v43 = vpop.f32.mrb[7].mxu0 }
 0x2c5   :  { %v461_v44 = vpack.c.bf16 %v447_v43, %v444_v40 }
 0x2c7   :  { %655 = vmatmul.mubr.bf16.gmra.mrb[12].mxu0 %v460_v36 }
 0x2c8   :  { %662 = vmatprep.mubr.bf16.mxu0 %v392_v11 }
 0x2cf   :  { %663 = vmatmul.mubr.bf16.gmra.mrb[16].mxu0 %v461_v44 }
 0x2d0   :  { %670 = vmatprep.mubr.bf16.mxu0 %v393_v19 }
 0x2d7   :  { %671 = vmatmul.mubr.bf16.gmra.mrb[20].mxu0 %v462_v42 }
 0x392   :  { %v813_v45 = vpop.f32.mrb[8].mxu0 }
 0x393   :  { %v814_v47 = vpop.f32.mrb[9].mxu0 }
 0x394   :  { %v815_v48 = vadd.f32 %v814_v47, %v813_v45  ;;  %v816_v49 = vpop.f32.mrb[10].mxu0 }
 0x395   :  { %v817_v50 = vpop.f32.mrb[11].mxu0 }
 0x396   :  { %v649_v51 = vadd.f32 %v815_v48, %v724_v46  ;;  %v818_v52 = vadd.f32 %v817_v50, %v816_v49 }
 0x398   :  { %679 = vst [vmem:[%s1130_s6] sm:$0xff] %v649_v51  ;;  %v652_v53 = vadd.f32 %v818_v52, %v724_v46 }
 0x39a   :  { %680 = vst [vmem:[%s1130_s6 + $0x8] sm:$0xff] %v652_v53  ;;  %v819_v54 = vpop.f32.mrb[12].mxu0 }
 0x39b   :  { %v820_v55 = vpop.f32.mrb[13].mxu0 }
 0x39c   :  { %v821_v56 = vadd.f32 %v820_v55, %v819_v54  ;;  %v822_v57 = vpop.f32.mrb[14].mxu0 }
 0x39d   :  { %v823_v58 = vpop.f32.mrb[15].mxu0 }
 0x39e   :  { %v657_v59 = vadd.f32 %v821_v56, %v724_v46  ;;  %v824_v60 = vadd.f32 %v823_v58, %v822_v57 }
 0x3a0   :  { %681 = vst [vmem:[%s1130_s6 + $0x10] sm:$0xff] %v657_v59  ;;  %v660_v61 = vadd.f32 %v824_v60, %v724_v46 }
 0x3a2   :  { %682 = vst [vmem:[%s1130_s6 + $0x18] sm:$0xff] %v660_v61  ;;  %v825_v62 = vpop.f32.mrb[16].mxu0 }
 0x3a3   :  { %v826_v63 = vpop.f32.mrb[17].mxu0 }
 0x3a4   :  { %v827_v0 = vadd.f32 %v826_v63, %v825_v62  ;;  %v828_v1 = vpop.f32.mrb[18].mxu0 }
 0x3a5   :  { %v829_v2 = vpop.f32.mrb[19].mxu0 }
 0x3a6   :  { %v665_v3 = vadd.f32 %v827_v0, %v724_v46  ;;  %v830_v4 = vadd.f32 %v829_v2, %v828_v1 }
 0x3a8   :  { %683 = vst [vmem:[%s1130_s6 + $0x20] sm:$0xff] %v665_v3  ;;  %v668_v5 = vadd.f32 %v830_v4, %v724_v46 }
 0x3aa   :  { %684 = vst [vmem:[%s1130_s6 + $0x28] sm:$0xff] %v668_v5  ;;  %v831_v8 = vpop.f32.mrb[20].mxu0 }
 0x3ab   :  { %v832_v9 = vpop.f32.mrb[21].mxu0 }
 0x3ac   :  { %v833_v10 = vadd.f32 %v832_v9, %v831_v8  ;;  %v834_v11 = vpop.f32.mrb[22].mxu0 }
 0x3ad   :  { %v835_v13 = vpop.f32.mrb[23].mxu0 }
 0x3ae   :  { %v673_v14 = vadd.f32 %v833_v10, %v724_v46  ;;  %v836_v15 = vadd.f32 %v835_v13, %v834_v11 }
 0x3b0   :  { %685 = vst [vmem:[%s1130_s6 + $0x30] sm:$0xff] %v673_v14  ;;  %v676_v16 = vadd.f32 %v836_v15, %v724_v46 }
 0x3b2   :  { %686 = vst [vmem:[%s1130_s6 + $0x38] sm:$0xff] %v676_v16 }

</bundles_post_ra>
